<compile_context>
chip_gen: v7x
topology: tpu7x:2x2x1
jax: 0.10.0
libtpu: 0.0.40
codegen_flags: <defaults>
</compile_context>

<pallas_src>
import jax
import jax.numpy as jnp
from jax import lax
from jax.experimental import pallas as pl
from jax.experimental.pallas import tpu as pltpu


def _supervised_loss_kernel(eeg_ref, dec_ref, y_ref, out_ref):
    # eeg_ref: (Bt, 1, T)  dec_ref: (Bt, C, T)  y_ref: (Bt, 1, C)
    # out_ref: (1, 8, 128) -- per-grid-block partial sum (lane-dense store)
    dec = dec_ref[...].astype(jnp.float32)        # (Bt, C, T)
    eeg = eeg_ref[...].astype(jnp.float32)        # (Bt, 1, T)
    y = y_ref[...].astype(jnp.float32)            # (Bt, 1, C)

    Bt, C, _T = dec.shape

    # First-occurrence argmax over the class axis (matches torch.argmax).
    iota_y = lax.broadcasted_iota(jnp.int32, (Bt, 1, C), 2)
    max_v = jnp.max(y, axis=2, keepdims=True)                               # (Bt,1,1)
    idx = jnp.min(jnp.where(y == max_v, iota_y, C), axis=2, keepdims=True)  # (Bt,1,1)
    iota_cls = lax.broadcasted_iota(jnp.int32, (Bt, C, 1), 1)
    onehot = (iota_cls == idx).astype(jnp.float32)                          # (Bt,C,1)

    # Per-class cross terms: cross[b,c] = <eeg[b], decsig[b,c]>
    # (VPU multiply, XLU lane-reduce; eeg broadcasts over the class axis.)
    prod = dec * eeg                                                        # (Bt,C,T)
    cross = jnp.sum(prod, axis=2, keepdims=True)                            # (Bt,C,1)

    contrib = (jnp.sum(eeg * eeg)
               + jnp.sum(dec * dec)
               - 2.0 * jnp.sum(onehot * cross))

    out_ref[...] = jnp.full(out_ref.shape, contrib, dtype=out_ref.dtype)


def supervised_loss(eeg, decsig, y, *, block_b=None):
    """eeg: [B, T], decsig: [B, C, T], y: [B, C]. Returns scalar float32 loss."""
    eeg = jnp.asarray(eeg, jnp.float32)
    decsig = jnp.asarray(decsig, jnp.float32)
    y = jnp.asarray(y, jnp.float32)

    B, T = eeg.shape
    _, C, _ = decsig.shape

    # Batch-block size: target ~4 MiB of decsig per grid step, which fits the
    # scoped-VMEM default with double buffering on v5e/v6e/v7x.
    if block_b is None:
        target_bytes = 4 * 1024 * 1024
        block_b = max(1, target_bytes // (C * T * 4))
    block_b = int(min(block_b, B))

    grid = int(pl.cdiv(B, block_b))
    b_pad = grid * block_b
    if b_pad != B:
        # Zero-padded samples contribute exactly zero to the loss.
        pad = b_pad - B
        eeg = jnp.pad(eeg, ((0, pad), (0, 0)))
        decsig = jnp.pad(decsig, ((0, pad), (0, 0), (0, 0)))
        y = jnp.pad(y, ((0, pad), (0, 0)))

    eeg3 = eeg.reshape(b_pad, 1, T)
    y3 = y.reshape(b_pad, 1, C)

    partials = pl.pallas_call(
        _supervised_loss_kernel,
        out_shape=jax.ShapeDtypeStruct((grid, 8, 128), jnp.float32),
        grid_spec=pltpu.PrefetchScalarGridSpec(
            num_scalar_prefetch=0,
            grid=(grid,),
            in_specs=[
                pl.BlockSpec((block_b, 1, T), lambda b: (b, 0, 0)),   # eeg rows
                pl.BlockSpec((block_b, C, T), lambda b: (b, 0, 0)),   # decsig slab
                pl.BlockSpec((block_b, 1, C), lambda b: (b, 0, 0)),   # y rows
            ],
            out_specs=pl.BlockSpec((1, 8, 128), lambda b: (b, 0, 0)),  # per-block partial
        ),
        compiler_params=pltpu.CompilerParams(
            dimension_semantics=("parallel",),   # no carried state -> megacore-safe
            vmem_limit_bytes=32 * 1024 * 1024,
        ),
    )(eeg3, decsig, y3)

    return jnp.sum(partials[:, 0, 0])


def _supervised_loss_ref(eeg, decsig, y):
    """Pure-JAX reference for verification."""
    idx = jnp.argmax(y, axis=1)
    sel = jnp.take_along_axis(decsig, idx[:, None, None], axis=1)[:, 0, :]
    loss1 = jnp.sum((eeg - sel) ** 2)
    loss2 = jnp.sum(decsig ** 2) - jnp.sum(sel ** 2)
    return loss1 + loss2


if __name__ == "__main__":
    # Primary small example: batch=2, classes=4, signal length=16.
    B, C, T = 2, 4, 16
    key = jax.random.PRNGKey(0)
    k1, k2, k3 = jax.random.split(key, 3)
    eeg = jax.random.normal(k1, (B, T), dtype=jnp.float32)
    decsig = jax.random.normal(k2, (B, C, T), dtype=jnp.float32)
    labels = jax.random.randint(k3, (B,), 0, C)
    y = jax.nn.one_hot(labels, C, dtype=jnp.float32)

    loss = jax.block_until_ready(supervised_loss(eeg, decsig, y))
    ref = _supervised_loss_ref(eeg, decsig, y)
    assert jnp.allclose(loss, ref, rtol=1e-5, atol=1e-4), (loss, ref)

    # Multi-block + zero-padding path (grid > 1, B not a multiple of block_b).
    B2 = 5
    k4, k5, k6 = jax.random.split(jax.random.PRNGKey(1), 3)
    eeg2 = jax.random.normal(k4, (B2, T), dtype=jnp.float32)
    decsig2 = jax.random.normal(k5, (B2, C, T), dtype=jnp.float32)
    y2 = jax.nn.one_hot(jax.random.randint(k6, (B2,), 0, C), C, dtype=jnp.float32)

    loss_b = jax.block_until_ready(supervised_loss(eeg2, decsig2, y2, block_b=2))
    ref_b = _supervised_loss_ref(eeg2, decsig2, y2)
    assert jnp.allclose(loss_b, ref_b, rtol=1e-5, atol=1e-4), (loss_b, ref_b)

    print("KERNEL_OK")
</pallas_src>

<mosaic_0001>
module attributes {stable_mosaic.version = 11 : i64} {
  func.func @_supervised_loss_kernel(%arg0: i32, %arg1: memref<2x1x16xf32, #tpu.memory_space<vmem>>, %arg2: memref<2x4x16xf32, #tpu.memory_space<vmem>>, %arg3: memref<2x1x4xf32, #tpu.memory_space<vmem>>, %arg4: memref<1x8x128xf32, #tpu.memory_space<vmem>>) attributes {dimension_semantics = [#tpu.dimension_semantics<parallel>], iteration_bounds = array<i64: 1>, scalar_prefetch = 0 : i64, scratch_operands = 0 : i64, tpu.core_type = #tpu.core_type<tc>, window_params = [{transform_indices = @transform_0, window_bounds = array<i64: 2, 1, 16>}, {transform_indices = @transform_1, window_bounds = array<i64: 2, 4, 16>}, {transform_indices = @transform_2, window_bounds = array<i64: 2, 1, 4>}, {transform_indices = @transform_3, window_bounds = array<i64: 1, 8, 128>}]} {
    %c0 = arith.constant 0 : index
    %c0_0 = arith.constant 0 : index
    %c0_1 = arith.constant 0 : index
    %0 = vector.load %arg2[%c0, %c0_0, %c0_1] : memref<2x4x16xf32, #tpu.memory_space<vmem>>, vector<2x4x16xf32>
    %c0_2 = arith.constant 0 : index
    %c0_3 = arith.constant 0 : index
    %c0_4 = arith.constant 0 : index
    %1 = vector.load %arg1[%c0_2, %c0_3, %c0_4] : memref<2x1x16xf32, #tpu.memory_space<vmem>>, vector<2x1x16xf32>
    %c0_5 = arith.constant 0 : index
    %c0_6 = arith.constant 0 : index
    %c0_7 = arith.constant 0 : index
    %2 = vector.load %arg3[%c0_5, %c0_6, %c0_7] : memref<2x1x4xf32, #tpu.memory_space<vmem>>, vector<2x1x4xf32>
    %3 = tpu.iota {dimensions = array<i32: 2>} : vector<2x1x4xi32>
    %cst = arith.constant dense<0xFF800000> : vector<2x1xf32>
    %4 = vector.multi_reduction <maximumf>, %2, %cst [2] : vector<2x1x4xf32> to vector<2x1xf32>
    %5 = vector.shape_cast %4 : vector<2x1xf32> to vector<2x1x1xf32>
    %6 = vector.broadcast %5 : vector<2x1x1xf32> to vector<2x1x4xf32>
    %7 = arith.cmpf oeq, %2, %6 : vector<2x1x4xf32>
    %c4_i32 = arith.constant 4 : i32
    %8 = vector.broadcast %c4_i32 : i32 to vector<2x1x4xi32>
    %9 = arith.select %7, %3, %8 : vector<2x1x4xi1>, vector<2x1x4xi32>
    %cst_8 = arith.constant dense<2147483647> : vector<2x1xi32>
    %10 = vector.multi_reduction <minsi>, %9, %cst_8 [2] : vector<2x1x4xi32> to vector<2x1xi32>
    %11 = vector.shape_cast %10 : vector<2x1xi32> to vector<2x1x1xi32>
    %12 = tpu.iota {dimensions = array<i32: 1>} : vector<2x4x1xi32>
    %13 = vector.broadcast %11 : vector<2x1x1xi32> to vector<2x4x1xi32>
    %14 = arith.cmpi eq, %12, %13 : vector<2x4x1xi32>
    %15 = arith.extui %14 : vector<2x4x1xi1> to vector<2x4x1xi32>
    %16 = arith.sitofp %15 : vector<2x4x1xi32> to vector<2x4x1xf32>
    %17 = vector.broadcast %1 : vector<2x1x16xf32> to vector<2x4x16xf32>
    %18 = arith.mulf %0, %17 : vector<2x4x16xf32>
    %cst_9 = arith.constant dense<0.000000e+00> : vector<2x4xf32>
    %19 = vector.multi_reduction <add>, %18, %cst_9 [2] : vector<2x4x16xf32> to vector<2x4xf32>
    %20 = vector.shape_cast %19 : vector<2x4xf32> to vector<2x4x1xf32>
    %21 = arith.mulf %1, %1 : vector<2x1x16xf32>
    %22 = vector.shape_cast %21 : vector<2x1x16xf32> to vector<1x2x1x16xf32>
    %cst_10 = arith.constant dense<0.000000e+00> : vector<1xf32>
    %23 = vector.multi_reduction <add>, %22, %cst_10 [1, 2, 3] : vector<1x2x1x16xf32> to vector<1xf32>
    %24 = vector.shape_cast %23 : vector<1xf32> to vector<1x1x1x1xf32>
    %25 = vector.extract %24[0, 0, 0, 0] : f32 from vector<1x1x1x1xf32>
    %26 = arith.mulf %0, %0 : vector<2x4x16xf32>
    %27 = vector.shape_cast %26 : vector<2x4x16xf32> to vector<1x2x4x16xf32>
    %cst_11 = arith.constant dense<0.000000e+00> : vector<1xf32>
    %28 = vector.multi_reduction <add>, %27, %cst_11 [1, 2, 3] : vector<1x2x4x16xf32> to vector<1xf32>
    %29 = vector.shape_cast %28 : vector<1xf32> to vector<1x1x1x1xf32>
    %30 = vector.extract %29[0, 0, 0, 0] : f32 from vector<1x1x1x1xf32>
    %31 = arith.addf %25, %30 : f32
    %32 = arith.mulf %16, %20 : vector<2x4x1xf32>
    %33 = vector.shape_cast %32 : vector<2x4x1xf32> to vector<1x2x4x1xf32>
    %cst_12 = arith.constant dense<0.000000e+00> : vector<1xf32>
    %34 = vector.multi_reduction <add>, %33, %cst_12 [1, 2, 3] : vector<1x2x4x1xf32> to vector<1xf32>
    %35 = vector.shape_cast %34 : vector<1xf32> to vector<1x1x1x1xf32>
    %36 = vector.extract %35[0, 0, 0, 0] : f32 from vector<1x1x1x1xf32>
    %cst_13 = arith.constant 2.000000e+00 : f32
    %37 = arith.mulf %cst_13, %36 : f32
    %38 = arith.subf %31, %37 : f32
    %39 = vector.broadcast %38 : f32 to vector<1x8x128xf32>
    %c0_14 = arith.constant 0 : index
    %c0_15 = arith.constant 0 : index
    %c0_16 = arith.constant 0 : index
    %40 = vector.load %arg4[%c0_14, %c0_15, %c0_16] : memref<1x8x128xf32, #tpu.memory_space<vmem>>, vector<1x8x128xf32>
    tpu.vector_store %arg4[%c0_14, %c0_15, %c0_16], %39 {strides = array<i32>} : memref<1x8x128xf32, #tpu.memory_space<vmem>>, vector<1x8x128xf32>,
    return
  }
  func.func @transform_0(%arg0: i32) -> (i32, i32, i32) {
    %c0_i32 = arith.constant 0 : i32
    %c0_i32_0 = arith.constant 0 : i32
    %c0_i32_1 = arith.constant 0 : i32
    return %arg0, %c0_i32, %c0_i32_0 : i32, i32, i32
  }
  func.func @transform_1(%arg0: i32) -> (i32, i32, i32) {
    %c0_i32 = arith.constant 0 : i32
    %c0_i32_0 = arith.constant 0 : i32
    %c0_i32_1 = arith.constant 0 : i32
    return %arg0, %c0_i32, %c0_i32_0 : i32, i32, i32
  }
  func.func @transform_2(%arg0: i32) -> (i32, i32, i32) {
    %c0_i32 = arith.constant 0 : i32
    %c0_i32_0 = arith.constant 0 : i32
    %c0_i32_1 = arith.constant 0 : i32
    return %arg0, %c0_i32, %c0_i32_0 : i32, i32, i32
  }
  func.func @transform_3(%arg0: i32) -> (i32, i32, i32) {
    %c0_i32 = arith.constant 0 : i32
    %c0_i32_0 = arith.constant 0 : i32
    %c0_i32_1 = arith.constant 0 : i32
    return %arg0, %c0_i32, %c0_i32_0 : i32, i32, i32
  }
}

</mosaic_0001>

<bundles_post_ra>
// kernel: tpu_custom_call.1
= control target key start
LH: loop header
LB: loop body
LE: loop exit
PB: predicated region body
PF: predicated region fallthrough
CT: control target
= control target key end

     0   :  { %8 = vsyncpa [#allocation3], 0  ;;  %s360_s0 = inlined_call_operand.hbm [shape: f32[2,1,16], index: 0, kind: input, shape index: {}]   ;;  %s361_s1 = inlined_call_operand.hbm [shape: f32[2,4,16], index: 1, kind: input, shape index: {}]   ;;  %s362_s2 = inlined_call_operand.vmem [shape: f32[2,1,4], index: 2, kind: input, shape index: {}]   ;;  %s363_s3 = inlined_call_operand.hbm [shape: f32[1,8,128], index: 3, kind: output, shape index: {}]  }
   0x1   :  { %9 = vsyncpa [#allocation6], 0 }
   0x2   :  { %10 = vsyncpa [#allocation4], 0  ;;  %s282_s12 = smov [#allocation2]   ;;  %s210_s16 = scalar_lea.hbm %s360_s0, 32 }
   0x3   :  { %s16_s13 = sshll.u32 %s282_s12, 4  ;;  %p211_p0 = scmp.ne.s32.totalorder %s360_s0, %s210_s16  ;;  %s17_s13 = int_to_ptr.vmem [resolvable:$true] %s16_s13 }
   0x4   :  { %p214_p1 = scmp.lt.u32.totalorder %s210_s16, %s360_s0 }
   0x6   :  { %p216_p2 = pnand %p214_p1, %p211_p0 }
   0x8   :  { %219 = shalt.err (!%p216_p2)
}
   0x9   :  { %s220_s21 = scalar_lea.vmem %s17_s13, 32  ;;  %p225_p4 = scmp.lt.s32.totalorder %s17_s13, %s17_s13 }
   0xa   :  { %p221_p3 = scmp.ne.s32.totalorder %s17_s13, %s220_s21  ;;  %p226_p5 = scmp.lt.s32.totalorder %s220_s21, %s220_s21 }
   0xc   :  { %p227_p6 = por %p226_p5, %p225_p4 }
   0xe   :  { %p228_p7 = pnand %p227_p6, %p221_p3 }
  0x10   :  { %231 = shalt.err (!%p228_p7)
}
  0x11   :  { %s283_s22 = smov 16   ;;  %s284_s23 = smov 1  }
  0x12   :  { %22 = dma.hbm_to_vmem [thread:$0]  %s360_s0, 32, %s17_s13, [#allocation3], %s283_s22, %s283_s22, %s284_s23  }
  0x13   :  { %s285_s26 = smov [#allocation5]   ;;  %s232_s30 = scalar_lea.hbm %s361_s1, 128 }
  0x14   :  { %s28_s27 = sshll.u32 %s285_s26, 4  ;;  %p233_p8 = scmp.ne.s32.totalorder %s361_s1, %s232_s30  ;;  %s29_s27 = int_to_ptr.vmem [resolvable:$true] %s28_s27 }
  0x15   :  { %p236_p9 = scmp.lt.u32.totalorder %s232_s30, %s361_s1 }
  0x17   :  { %p238_p10 = pnand %p236_p9, %p233_p8 }
  0x19   :  { %241 = shalt.err (!%p238_p10)
}
  0x1a   :  { %s242_s8 = scalar_lea.vmem %s29_s27, 128  ;;  %p247_p12 = scmp.lt.s32.totalorder %s29_s27, %s29_s27 }
  0x1b   :  { %p243_p11 = scmp.ne.s32.totalorder %s29_s27, %s242_s8  ;;  %p248_p13 = scmp.lt.s32.totalorder %s242_s8, %s242_s8 }
  0x1d   :  { %p249_p0 = por %p248_p13, %p247_p12 }
  0x1f   :  { %p250_p1 = pnand %p249_p0, %p243_p11 }
  0x21   :  { %253 = shalt.err (!%p250_p1)
}
  0x22   :  { %s286_s0 = smov 64   ;;  %s287_s9 = smov 4  }
  0x23   :  { %34 = dma.hbm_to_vmem [thread:$0]  %s361_s1, 128, %s29_s27, [#allocation6], %s286_s0, %s286_s0, %s287_s9  }
  0x24   :  { %276 = dma.done.wait [#allocation3], 32  }
  0x25   :  { %277 = vsyncadd [#allocation3], 4294967264 }
  0x26   :  { %278 = dma.done.wait [#allocation6], 128  }
  0x27   :  { %279 = vsyncadd [#allocation6], 4294967168  ;;  %vm51_vm0 = vcmask 24576   ;;  %v47_v0 = vld [vmem:[%s362_s2] sm:$0x1]  ;;  %v49_v4 = vlaneseq  ;;  %vm122_vm4 = vcmask 125952  }
  0x28   :  { %v48_v1 = vld [vmem:[%s362_s2 + $0x1] sm:$0x1]  ;;  %v52_v2 = vsel %vm51_vm0, %v47_v0, -inf  ;;  %v45_v18 = vld [vmem:[#allocation2] sm:$0x1]  ;;  %vm131_vm6 = vcmask 122880  }
  0x29   :  { %53 = vmax.xlane.f32.xlu0 %v52_v2  ;;  %v55_v3 = vsel %vm51_vm0, %v48_v1, -inf  ;;  %v50_v5 = vand.u32 127, %v49_v4  ;;  %v93_v16 = vshrl.u32 %v49_v4, 7  ;;  %v43_v21 = vld [vmem:[#allocation5] sm:$0xf]  ;;  %v129_v38 = vmul.f32 %v45_v18, %v45_v18  ;;  %s289_s19 = smov [#allocation7]  }
  0x2a   :  { %v46_v22 = vld [vmem:[#allocation2 + $0x1] sm:$0x1]  ;;  %v44_v28 = vld [vmem:[#allocation5 + $0x4] sm:$0xf]  ;;  %v144_v36 = vmul.f32 %v43_v21, %v43_v21  ;;  %v288_v57 = vmov 0.0   ;;  %vm161_vm9 = vcmask 3072  }
  0x2b   :  { %v96_v17 = vsub.s32 0, %v93_v16  ;;  %v145_v37 = vmul.f32 %v44_v28, %v44_v28  ;;  %v130_v39 = vmul.f32 %v46_v22, %v46_v22  ;;  %v132_v42 = vsel %vm131_vm6, %v129_v38, 0.0  ;;  %s184_s20 = sshll.u32 %s289_s19, 4  ;;  %s185_s20 = int_to_ptr.vmem [resolvable:$true] %s184_s20 }
  0x2c   :  { %v146_v40 = vsel %vm122_vm4, %v144_v36, 0.0  ;;  %s254_s22 = scalar_lea.vmem %s185_s20, 128  ;;  %p259_p3 = scmp.lt.s32.totalorder %s185_s20, %s185_s20 }
  0x2d   :  { %56 = vmax.xlane.f32.xlu0 %v55_v3  ;;  %v113_v20 = vrot.slane %v45_v18, %v96_v17  ;;  %v117_v27 = vrot.slane %v46_v22, %v96_v17  ;;  %v147_v41 = vsel %vm122_vm4, %v145_v37, 0.0  ;;  %v133_v43 = vsel %vm131_vm6, %v130_v39, 0.0  ;;  %p255_p2 = scmp.ne.s32.totalorder %s185_s20, %s254_s22  ;;  %p260_p4 = scmp.lt.s32.totalorder %s254_s22, %s254_s22 }
  0x2e   :  { %v148_v44 = vadd.f32 %v147_v41, %v146_v40  ;;  %v134_v45 = vadd.f32 %v133_v43, %v132_v42 }
  0x2f   :  { %v120_v26 = vmul.f32 %v113_v20, %v43_v21  ;;  %v121_v33 = vmul.f32 %v117_v27, %v44_v28  ;;  %p261_p5 = por %p260_p4, %p259_p3 }
  0x31   :  { %v123_v32 = vsel %vm122_vm4, %v120_v26, 0.0  ;;  %v126_v35 = vsel %vm122_vm4, %v121_v33, 0.0  ;;  %p262_p6 = pnand %p261_p5, %p255_p2 }
  0xb6   :  { %v54_v6 = vpop.xlane.xlu0 %53 }
  0xb7   :  { %vm58_vm1 = vcmp.eq.f32.partialorder %v47_v0, %v54_v6 }
  0xb8   :  { %v60_v7 = vsel %vm58_vm1, %v50_v5, 4 }
  0xb9   :  { %v62_v8 = vsel %vm51_vm0, %v60_v7, 2147483647 }
  0xba   :  { %v57_v9 = vpop.xlane.xlu0 %56  ;;  %v64_v10 = vshra.s32 %v62_v8, 16  ;;  %v63_v19 = vand.u32 65535, %v62_v8 }
  0xbb   :  { %vm59_vm2 = vcmp.eq.f32.partialorder %v48_v1, %v57_v9 }
  0xbc   :  { %v61_v11 = vsel %vm59_vm2, %v50_v5, 4  ;;  %v66_v12 = vcvt.s32.f32 %v64_v10  ;;  %v65_v24 = vcvt.s32.f32 %v63_v19 }
  0xbd   :  { %v77_v13 = vsel %vm51_vm0, %v61_v11, 2147483647 }
  0xbe   :  { %67 = vmin.xlane.f32.xlu1 %v66_v12  ;;  %v79_v14 = vshra.s32 %v77_v13, 16  ;;  %v78_v25 = vand.u32 65535, %v77_v13 }
  0xc0   :  { %v81_v15 = vcvt.s32.f32 %v79_v14  ;;  %v80_v31 = vcvt.s32.f32 %v78_v25 }
  0xc2   :  { %82 = vmin.xlane.f32.xlu1 %v81_v15 }
 0x14b   :  { %v68_v23 = vpop.xlane.xlu1 %67 }
 0x14c   :  { %vm69_vm3 = vcmp.eq.f32.partialorder %v66_v12, %v68_v23  ;;  %v74_v46 = vcvt.f32.s32 %v68_v23 }
 0x14d   :  { %v70_v29 = vsel %vm69_vm3, %v65_v24, inf }
 0x14e   :  { %71 = vmin.xlane.f32.xlu0 %v70_v29  ;;  %v75_v48 = vshll.u32 %v74_v46, 16 }
 0x14f   :  { %v83_v30 = vpop.xlane.xlu1 %82 }
 0x150   :  { %vm84_vm5 = vcmp.eq.f32.partialorder %v81_v15, %v83_v30  ;;  %v89_v49 = vcvt.f32.s32 %v83_v30 }
 0x151   :  { %v85_v34 = vsel %vm84_vm5, %v80_v31, inf }
 0x152   :  { %86 = vmin.xlane.f32.xlu1 %v85_v34  ;;  %124 = vadd.xlane.f32.xlu0 %v123_v32  ;;  %v90_v53 = vshll.u32 %v89_v49, 16 }
 0x156   :  { %127 = vadd.xlane.f32.xlu1 %v126_v35  ;;  %135 = vadd.xlane.f32.xlu0 %v134_v45 }
 0x15a   :  { %149 = vadd.xlane.f32.xlu1 %v148_v44 }
 0x1db   :  { %v72_v47 = vpop.xlane.xlu0 %71 }
 0x1dc   :  { %v73_v50 = vcvt.f32.s32 %v72_v47 }
 0x1de   :  { %v76_v51 = vadd.s32 %v75_v48, %v73_v50 }
 0x1df   :  { %v87_v52 = vpop.xlane.xlu1 %86  ;;  %v125_v59 = vpop.xlane.xlu0 %124 }
 0x1e0   :  { %v88_v54 = vcvt.f32.s32 %v87_v52  ;;  %v97_v55 = vrot.slane %v76_v51, %v96_v17 }
 0x1e2   :  { %v91_v56 = vadd.s32 %v90_v53, %v88_v54  ;;  %vm102_vm7 = vcmp.eq.s32.totalorder %v93_v16, %v97_v55 }
 0x1e3   :  { %v194_v58 = vsel %vm102_vm7, 1.0, %v288_v57  ;;  %v128_v61 = vpop.xlane.xlu1 %127  ;;  %v136_v5 = vpop.xlane.xlu0 %135 }
 0x1e4   :  { %v101_v60 = vrot.slane %v91_v56, %v96_v17  ;;  %v159_v62 = vmul.f32 %v194_v58, %v125_v59  ;;  %v137_v7 = vrot.slane %v136_v5, 4 }
 0x1e6   :  { %vm103_vm8 = vcmp.eq.s32.totalorder %v93_v16, %v101_v60  ;;  %v162_v1 = vsel %vm161_vm9, %v159_v62, 0.0  ;;  %v138_v9 = vadd.f32 %v137_v7, %v136_v5 }
 0x1e7   :  { %v195_v63 = vsel %vm103_vm8, 1.0, %v288_v57  ;;  %v150_v4 = vpop.xlane.xlu1 %149 }
 0x1e8   :  { %v160_v0 = vmul.f32 %v195_v63, %v128_v61  ;;  %v151_v6 = vrot.slane %v150_v4, 4  ;;  %v139_v11 = vrot.slane %v138_v9, 2 }
 0x1ea   :  { %v163_v2 = vsel %vm161_vm9, %v160_v0, 0.0  ;;  %v152_v8 = vadd.f32 %v151_v6, %v150_v4  ;;  %v140_v13 = vadd.f32 %v139_v11, %v138_v9 }
 0x1eb   :  { %v164_v3 = vadd.f32 %v163_v2, %v162_v1 }
 0x1ec   :  { %v153_v10 = vrot.slane %v152_v8, 2  ;;  %v141_v14 = vrot.slane %v140_v13, 1 }
 0x1ed   :  { %165 = vadd.xlane.f32.xlu0 %v164_v3 }
 0x1ee   :  { %v154_v12 = vadd.f32 %v153_v10, %v152_v8  ;;  %v142_v16 = vadd.f32 %v141_v14, %v140_v13 }
 0x1f0   :  { %v155_v15 = vrot.slane %v154_v12, 1  ;;  %196 = vpush %v142_v16 }
 0x1f2   :  { %v156_v17 = vadd.f32 %v155_v15, %v154_v12 }
 0x1f4   :  { %198 = vpush %v156_v17 }
 0x221   :  { %s197_s1 = spop %196 }
 0x225   :  { %s199_s2 = spop %198 }
 0x226   :  { %s158_s16 = sadd.f32 %s199_s2, %s197_s1 }
 0x27a   :  { %v166_v18 = vpop.xlane.xlu0 %165 }
 0x27b   :  { %v167_v19 = vrot.slane %v166_v18, 4 }
 0x27d   :  { %v168_v20 = vadd.f32 %v167_v19, %v166_v18 }
 0x27f   :  { %v169_v21 = vrot.slane %v168_v20, 2 }
 0x281   :  { %v170_v22 = vadd.f32 %v169_v21, %v168_v20 }
 0x283   :  { %v171_v23 = vrot.slane %v170_v22, 1 }
 0x285   :  { %v172_v24 = vadd.f32 %v171_v23, %v170_v22 }
 0x287   :  { %200 = vpush %v172_v24 }
 0x2b8   :  { %s201_s17 = spop %200 }
 0x2b9   :  { %s174_s18 = smul.f32 2.0, %s201_s17 }
 0x2bb   :  { %s175_s21 = ssub.f32 %s158_s16, %s174_s18 }
 0x2bd   :  { %v176_v25 = vstv %s175_s21 }
 0x2be   :  { %177 = vst [vmem:[#allocation7] sm:$0xff] %v176_v25 }
 0x2bf   :  { %265 = shalt.err (!%p262_p6)
}
 0x2c0   :  { %s266_s25 = scalar_lea.hbm %s363_s3, 128 }
 0x2c1   :  { %p267_p7 = scmp.ne.s32.totalorder %s363_s3, %s266_s25  ;;  %p270_p8 = scmp.lt.u32.totalorder %s266_s25, %s363_s3 }
 0x2c3   :  { %p272_p9 = pnand %p270_p8, %p267_p7 }
 0x2c5   :  { %275 = shalt.err (!%p272_p9)
}
 0x2c6   :  { %187 = dma.vmem_to_hbm [thread:$0]  %s185_s20, 128, %s363_s3, [#allocation4]  }
 0x2c7   :  { %280 = dma.done.wait [#allocation4], 128  }
 0x2c8   :  { %281 = vsyncadd [#allocation4], 4294967168 }
 0x2c9   :  { %191 = vsyncpa [#allocation3], 1 }
 0x2ca   :  { %192 = vsyncpa [#allocation6], 1 }
 0x2cb   :  { %193 = vsyncpa [#allocation4], 1 }

</bundles_post_ra>
